<compile_context>
chip_gen: v6e
topology: v6e:2x2x1
jax: 0.10.0
libtpu: 0.0.40
codegen_flags: <defaults>
</compile_context>

<pallas_src>
import functools
import math

import jax
import jax.numpy as jnp
from jax.experimental import pallas as pl
from jax.experimental.pallas import tpu as pltpu


def _build_pe(max_len: int, d_model: int, dtype=jnp.float32) -> jnp.ndarray:
    """Positional-encoding table, shape (max_len, d_model), built once in `dtype`."""
    position = jnp.arange(0, max_len, dtype=jnp.float32)[:, None]             # (L, 1)
    div_term = jnp.exp(
        jnp.arange(0, d_model, 2, dtype=jnp.float32) * (-math.log(10000.0) / d_model)
    )                                                                          # (ceil(D/2),)
    angles = position * div_term                                               # (L, ceil(D/2))
    pe = jnp.zeros((max_len, d_model), dtype=jnp.float32)
    pe = pe.at[:, 0::2].set(jnp.sin(angles))
    pe = pe.at[:, 1::2].set(jnp.cos(angles[:, : d_model // 2]))                # odd-D safe
    return pe.astype(dtype)                                                    # (L, D)


def _pe_add_kernel(x_ref, pe_ref, o_ref, *, batch: int, d_model: int):
    # x_ref / o_ref: (ts, batch*d_model); pe_ref: (ts, d_model).
    # Broadcast pe across the batch lane-groups with static slices (128-aligned
    # for d_model=256 -> full-width unmasked loads/stores, no reshape/relayout).
    pe_blk = pe_ref[...]
    for b in range(batch):                      # static unroll (batch is small)
        sl = slice(b * d_model, (b + 1) * d_model)
        o_ref[:, sl] = x_ref[:, sl] + pe_blk


def positional_encoding_forward(
    x: jnp.ndarray,
    pe: jnp.ndarray,
    *,
    block_bytes: int = 2 * 1024 * 1024,
    in_place: bool = False,
) -> jnp.ndarray:
    """Eval-mode forward: x + pe[:S] broadcast over batch.

    x:  (S, B, D) sequence-first activations.
    pe: (max_len, D) table (a torch-style (max_len, 1, D) buffer is accepted),
        ideally already in x.dtype so no per-call cast is emitted.
    """
    S, B, D = x.shape
    if pe.ndim == 3:                              # accept (max_len, 1, D)
        pe = pe.reshape(pe.shape[0], pe.shape[-1])
    max_len = pe.shape[0]
    assert S <= max_len and pe.shape[1] == D
    if pe.dtype != x.dtype:                       # cold path; pre-build in x.dtype
        pe = pe.astype(x.dtype)

    itemsize = jnp.dtype(x.dtype).itemsize
    sub = 8 if itemsize >= 4 else (16 if itemsize == 2 else 32)

    if S < sub:
        # Tiny-S fallback: one full-extent block (slice pe so its leading dim
        # equals the block dim and the (8,128) block constraint is satisfied).
        ts = S
        pe = pe[:S]
    else:
        row_bytes = B * D * itemsize
        ts = max(1, block_bytes // row_bytes)
        ts = min(ts, pl.cdiv(S, 2))               # >= 2 grid steps (v7x megacore)
        ts = max(sub, (ts // sub) * sub)          # dense sublane tiling (8/16 mult.)

    grid = (pl.cdiv(S, ts),)
    x2 = x.reshape(S, B * D)                      # free, contiguous reshape

    out2 = pl.pallas_call(
        functools.partial(_pe_add_kernel, batch=B, d_model=D),
        out_shape=jax.ShapeDtypeStruct((S, B * D), x.dtype),
        grid=grid,
        in_specs=[
            pl.BlockSpec((ts, B * D), lambda i: (i, 0)),   # x, dense rows
            pl.BlockSpec((ts, D), lambda i: (i, 0)),       # compact pe
        ],
        out_specs=pl.BlockSpec((ts, B * D), lambda i: (i, 0)),
        compiler_params=pltpu.CompilerParams(
            dimension_semantics=("parallel",),
            vmem_limit_bytes=32 * 1024 * 1024,
        ),
        input_output_aliases=({0: 0} if in_place else {}),
    )(x2, pe)

    return out2.reshape(S, B, D)


if __name__ == "__main__":
    # Small shapes consistent with the module: (seq, batch, d_model), d_model=256.
    S, B, D = 40, 2, 256
    MAX_LEN = 128

    key = jax.random.PRNGKey(0)
    x = jax.random.normal(key, (S, B, D), dtype=jnp.float32)

    # Table built once, at max_len, in the activation dtype (no per-call slice/cast).
    pe = _build_pe(MAX_LEN, D, dtype=x.dtype)     # (MAX_LEN, D)

    # Default block_bytes: with row_bytes = 2*256*4 = 2 KiB, ts = 16 -> 3 grid
    # steps, so the pipelined / megacore-parallel path is exercised.
    out = positional_encoding_forward(x, pe)
    out = jax.block_until_ready(out)

    # Sanity check against plain-JAX reference (eval-mode: dropout is identity).
    ref = x + pe[:S][:, None, :]
    assert out.shape == (S, B, D)
    assert jnp.allclose(out, ref, atol=1e-6), "mismatch vs reference"

    print("KERNEL_OK")
</pallas_src>

<mosaic_0001>
module attributes {stable_mosaic.version = 11 : i64} {
  func.func @_pe_add_kernel(%arg0: i32, %arg1: memref<16x512xf32, #tpu.memory_space<vmem>>, %arg2: memref<16x256xf32, #tpu.memory_space<vmem>>, %arg3: memref<16x512xf32, #tpu.memory_space<vmem>>) attributes {dimension_semantics = [#tpu.dimension_semantics<parallel>], iteration_bounds = array<i64: 3>, scalar_prefetch = 0 : i64, scratch_operands = 0 : i64, tpu.core_type = #tpu.core_type<tc>, window_params = [{transform_indices = @transform_0, window_bounds = array<i64: 16, 512>}, {transform_indices = @transform_1, window_bounds = array<i64: 16, 256>}, {transform_indices = @transform_2, window_bounds = array<i64: 16, 512>}]} {
    %c0 = arith.constant 0 : index
    %c0_0 = arith.constant 0 : index
    %0 = vector.load %arg2[%c0, %c0_0] : memref<16x256xf32, #tpu.memory_space<vmem>>, vector<16x256xf32>
    %c0_1 = arith.constant 0 : index
    %c0_2 = arith.constant 0 : index
    %1 = vector.load %arg1[%c0_1, %c0_2] : memref<16x512xf32, #tpu.memory_space<vmem>>, vector<16x256xf32>
    %2 = arith.addf %1, %0 : vector<16x256xf32>
    %c0_3 = arith.constant 0 : index
    %c0_4 = arith.constant 0 : index
    %3 = vector.load %arg3[%c0_3, %c0_4] : memref<16x512xf32, #tpu.memory_space<vmem>>, vector<16x256xf32>
    tpu.vector_store %arg3[%c0_3, %c0_4], %2 {strides = array<i32>} : memref<16x512xf32, #tpu.memory_space<vmem>>, vector<16x256xf32>,
    %c0_5 = arith.constant 0 : index
    %c256 = arith.constant 256 : index
    %4 = vector.load %arg1[%c0_5, %c256] : memref<16x512xf32, #tpu.memory_space<vmem>>, vector<16x256xf32>
    %5 = arith.addf %4, %0 : vector<16x256xf32>
    %c0_6 = arith.constant 0 : index
    %c256_7 = arith.constant 256 : index
    %6 = vector.load %arg3[%c0_6, %c256_7] : memref<16x512xf32, #tpu.memory_space<vmem>>, vector<16x256xf32>
    tpu.vector_store %arg3[%c0_6, %c256_7], %5 {strides = array<i32>} : memref<16x512xf32, #tpu.memory_space<vmem>>, vector<16x256xf32>,
    return
  }
  func.func @transform_0(%arg0: i32) -> (i32, i32) {
    %c0_i32 = arith.constant 0 : i32
    %c0_i32_0 = arith.constant 0 : i32
    return %arg0, %c0_i32 : i32, i32
  }
  func.func @transform_1(%arg0: i32) -> (i32, i32) {
    %c0_i32 = arith.constant 0 : i32
    %c0_i32_0 = arith.constant 0 : i32
    return %arg0, %c0_i32 : i32, i32
  }
  func.func @transform_2(%arg0: i32) -> (i32, i32) {
    %c0_i32 = arith.constant 0 : i32
    %c0_i32_0 = arith.constant 0 : i32
    return %arg0, %c0_i32 : i32, i32
  }
}

</mosaic_0001>

<bundles_post_ra>
// kernel: tpu_custom_call.1
= control target key start
LH: loop header
LB: loop body
LE: loop exit
PB: predicated region body
PF: predicated region fallthrough
CT: control target
= control target key end

     0   :  { %7 = vsyncpa [#allocation3], 0  ;;  %s822_s0 = inlined_call_operand.hbm [shape: f32[40,512], index: 0, kind: input, shape index: {}]   ;;  %s823_s1 = inlined_call_operand.hbm [shape: f32[128,256], index: 1, kind: input, shape index: {}]   ;;  %s824_s2 = inlined_call_operand.hbm [shape: f32[40,512], index: 2, kind: output, shape index: {}]  }
   0x1   :  { %9 = vsyncpa [#allocation3 + $0x1], 0 }
   0x2   :  { %10 = vsyncpa [#allocation6], 0 }
   0x3   :  { %12 = vsyncpa [#allocation6 + $0x1], 0 }
   0x4   :  { %13 = vsyncpa [#allocation4], 0 }
   0x5   :  { %15 = vsyncpa [#allocation4 + $0x1], 0  ;;  %s602_s9 = smov 0   ;;  %s604_s10 = smov 0  }
   0x6   :  { %s606_s11 = smov 0   ;;  %s608_s12 = smov 0  }
   0x7 LB: > { %s623_s13 = sadd.s32 4294967295, %s576_s12   ;;  %s370_s14 = sadd.s32 4294967294, %s576_s12   ;;  %s576_s12 = sphi %s608_s12, %s834_s12   ;;  %s572_s11 = sphi %s606_s11, %s833_s11   ;;  %s568_s10 = sphi %s604_s10, %s832_s10   ;;  %s564_s9 = sphi %s602_s9, %s831_s9  }
   0x8   : > { %s627_s15 = sadd.s32 1, %s576_s12   ;;  %s28_s16 = sadd.s32 1, %s572_s11 }
   0x9   : > { %s25_s17 = ssub.s32 %s576_s12, %s627_s15  ;;  %p35_p0 = scmp.ne.s32.totalorder %s572_s11, %s568_s10 }
   0xa   : > { %p26_p1 = scmp.eq.s32.totalorder %s25_s17, 0  ;;  %p36_p2 = scmp.eq.s32.totalorder %s576_s12, 0 }
   0xb   : > { %p41_p3 = scmp.ne.s32.totalorder %s568_s10, %s564_s9  ;;  %p42_p4 = scmp.eq.s32.totalorder %s623_s13, 0 }
   0xc   : > { %s639_s18 = scalar_select %p26_p1, %s572_s11, %s28_s16  }
   0xd   : > { %p641_p5 = por %p36_p2, %p35_p0  ;;  %p645_p6 = por %p42_p4, %p41_p3 }
   0xe   : > { %p91_p7 = scmp.eq.s32.totalorder %s623_s13, 2  ;;  %p97_p8 = scmp.eq.s32.totalorder %s370_s14, 2 }
   0xf   : > { %p372_p11 = scmp.ge.s32.totalorder %s576_s12, 3 }
  0x10   : > { %p650_p9 = por %p91_p7, %p35_p0  ;;  %p654_p10 = por %p97_p8, %p41_p3 }
  0x11   : > { %113 = sbr.rel (%p372_p11) target bundleno = 79 (0x4f), region = 16 }
  0x12   : > { %s827_s21 = scalar_select %p650_p9, 1, 0 }
  0x13   : > { %s828_s22 = scalar_select %p654_p10, 1, 0 }
  0x16   : > { %116 = sbr.rel (!%p641_p5) target bundleno = 54 (0x36), region = 20  ;;  %s117_s23 = sand.u32 (%p641_p5), 1, %s572_s11  }
  0x17   : > { %s374_s24 = sshll.u32 (%p641_p5), %s576_s12, 1  ;;  %s373_s25 = sshll.u32 (%p641_p5), %s117_s23, 6 }
  0x18   : > { %s123_s26 = ssub.s32 (%p641_p5), 5, %s374_s24  ;;  %s666_s29 = scalar_lea.sflag (%p641_p5), [#allocation3], %s117_s23 }
  0x19   : > { %p124_p12 = scmp.lt.s32.totalorder (%p641_p5), %s123_s26, 2  ;;  %s121_s30 = scalar_lea.vmem (%p641_p5), [#allocation2], %s373_s25 }
  0x1b   : > { %s836_s26 = smov (!%p124_p12, %s123_s26), 2 }
  0x1c   : > { %s663_s27 = sshll.u32 %s836_s26, 9 }
  0x1d   : > { %s129_s28 = ssub.s32 1024, %s663_s27 }
  0x1e   : > { %130 = vsyncadd %s666_s29, %s129_s28  ;;  %p377_p13 = scmp.ne.s32.totalorder %s663_s27, 0  ;;  %s403_s3 = sshll.u32 %s576_s12, 10 }
  0x1f   : > { %s674_s6 = scalar_lea.hbm %s822_s0, %s403_s3  ;;  %s136_s7 = sshll.u32 %s121_s30, 4  ;;  %s676_s7 = int_to_ptr.vmem [resolvable:$true] %s136_s7 }
  0x20   : > { %s456_s8 = scalar_lea.hbm %s674_s6, %s663_s27  ;;  %s460_s17 = scalar_lea.hbm %s822_s0, 2560 }
  0x21   : > { %p457_p0 = scmp.ne.s32.totalorder %s674_s6, %s456_s8  ;;  %p461_p3 = scmp.lt.s32.totalorder %s674_s6, %s822_s0 }
  0x22   : > { %p462_p4 = scmp.lt.s32.totalorder %s460_s17, %s456_s8 }
  0x23   : > { %p458_p1 = pnand %p457_p0, %p377_p13 }
  0x24   : > { %p463_p7 = por %p462_p4, %p461_p3 }
  0x25   : > { %p459_p2 = pneg %p458_p1 }
  0x27   : > { %p464_p8 = pnand %p463_p7, %p459_p2 }
  0x29   : > { %467 = shalt.err (!%p464_p8)
}
  0x2a   : > { %s468_s25 = scalar_lea.vmem %s676_s7, %s663_s27  ;;  %s578_s26 = smov [#allocation2]  }
  0x2b   : > { %p469_p11 = scmp.ne.s32.totalorder %s676_s7, %s468_s25  ;;  %s472_s28 = sshll.u32 %s578_s26, 4  ;;  %s473_s28 = int_to_ptr.vmem [resolvable:$false] %s472_s28 }
  0x2c   : > { %s474_s30 = scalar_lea.vmem %s473_s28, 2048  ;;  %p475_p1 = scmp.lt.s32.totalorder %s676_s7, %s473_s28 }
  0x2d   : > { %p470_p12 = pnand %p469_p11, %p377_p13  ;;  %p476_p10 = scmp.lt.s32.totalorder %s474_s30, %s468_s25 }
  0x2f   : > { %p471_p0 = pneg %p470_p12  ;;  %p477_p9 = por %p476_p10, %p475_p1 }
  0x31   : > { %p478_p3 = pnand %p477_p9, %p471_p0 }
  0x33   : > { %481 = shalt.err (!%p478_p3)
}
  0x34   : > { %s579_s3 = smov 512   ;;  %s580_s4 = smov 32  }
  0x35   : > { %142 = dma.hbm_to_vmem [thread:$0]  (%p377_p13), %s674_s6, %s663_s27, %s676_s7, %s666_s29, %s579_s3, %s579_s3, %s580_s4  }
  0x36 PF: > { %s146_s5 = sand.u32 1, %s572_s11   ;;  %s405_s8 = sshll.u32 %s576_s12, 9 }
  0x37   : > { %s382_s14 = sshll.u32 %s146_s5, 5  ;;  %s707_s23 = scalar_lea.hbm %s823_s1, %s405_s8 }
  0x38   : > { %s150_s24 = scalar_lea.vmem [#allocation5], %s382_s14  ;;  %s711_s27 = scalar_lea.sflag [#allocation6], %s146_s5 }
  0x39   : > { %s158_s25 = sshll.u32 %s150_s24, 4  ;;  %s482_s29 = scalar_lea.hbm %s707_s23, 512  ;;  %s709_s25 = int_to_ptr.vmem [resolvable:$true] %s158_s25 }
  0x3a   : > { %p483_p9 = scmp.ne.s32.totalorder %s707_s23, %s482_s29  ;;  %s486_s26 = scalar_lea.hbm %s823_s1, 4096 }
  0x3b   : > { %p487_p2 = scmp.lt.s32.totalorder %s707_s23, %s823_s1  ;;  %p488_p4 = scmp.lt.s32.totalorder %s486_s26, %s482_s29 }
  0x3c   : > { %p484_p10 = pnand %p483_p9, %p641_p5 }
  0x3d   : > { %p489_p7 = por %p488_p4, %p487_p2 }
  0x3e   : > { %p485_p13 = pneg %p484_p10 }
  0x40   : > { %p490_p8 = pnand %p489_p7, %p485_p13 }
  0x42   : > { %493 = shalt.err (!%p490_p8)
}
  0x43   : > { %s494_s3 = scalar_lea.vmem %s709_s25, 512  ;;  %s581_s4 = smov [#allocation5]  }
  0x44   : > { %p495_p11 = scmp.ne.s32.totalorder %s709_s25, %s494_s3  ;;  %s498_s5 = sshll.u32 %s581_s4, 4  ;;  %s499_s5 = int_to_ptr.vmem [resolvable:$false] %s498_s5 }
  0x45   : > { %s500_s8 = scalar_lea.vmem %s499_s5, 1024  ;;  %p501_p1 = scmp.lt.s32.totalorder %s709_s25, %s499_s5 }
  0x46   : > { %p496_p12 = pnand %p495_p11, %p641_p5  ;;  %p502_p3 = scmp.lt.s32.totalorder %s500_s8, %s494_s3 }
  0x48   : > { %p497_p0 = pneg %p496_p12  ;;  %p503_p9 = por %p502_p3, %p501_p1 }
  0x4a   : > { %p504_p10 = pnand %p503_p9, %p497_p0 }
  0x4c   : > { %507 = shalt.err (!%p504_p10)
}
  0x4d   : > { %s582_s14 = smov 256   ;;  %s583_s16 = smov 16  }
  0x4e   : > { %409 = dma.hbm_to_vmem [thread:$0]  (%p641_p5), %s707_s23, 512, %s709_s25, %s711_s27, %s582_s14, %s582_s14, %s583_s16  }
  0x4f PF: > { %p386_p13 = scmp.ge.s32.totalorder %s576_s12, 1  ;;  %p166_p2 = scmp.lt.s32.totalorder %s576_s12, 4 }
  0x51   : > { %p167_p4 = pnand %p386_p13, %p166_p2 }
  0x52   : > { %s737_s17 = sand.u32 (!%p167_p4), 1, %s568_s10  }
  0x53   : > { %170 = sbr.rel (%p167_p4) target bundleno = 127 (0x7f), region = 28  ;;  %s387_s24 = sshll.u32 (!%p167_p4), %s737_s17, 6 }
  0x54   : > { %s173_s29 = scalar_lea.sflag (!%p167_p4), [#allocation3], %s737_s17  ;;  %s176_s6 = scalar_lea.vmem (!%p167_p4), [#allocation2], %s387_s24 }
  0x58   : > { %551 = dma.done.wait (%p645_p6), %s173_s29, 1024  }
  0x59   : > { %553 = vsyncadd (%p645_p6), %s173_s29, 4294966272  ;;  %s388_s19 = sshll.u32 %s737_s17, 5  ;;  %s182_s23 = scalar_lea.sflag [#allocation6], %s737_s17 }
  0x5a   : > { %s185_s25 = scalar_lea.vmem [#allocation5], %s388_s19 }
  0x5b   : > { %555 = dma.done.wait (%p645_p6), %s182_s23, 512  }
  0x5c   : > { %557 = vsyncadd (%p645_p6), %s182_s23, 4294966784  ;;  %v224_v0 = vld [vmem:[%s185_s25] sm:$0xff]  ;;  %v225_v2 = vld [vmem:[%s185_s25 + $0x8] sm:$0xff]  ;;  %s751_s27 = scalar_lea.vmem [#allocation7], %s387_s24  ;;  %s253_s20 = scalar_lea.sflag [#allocation4], %s737_s17 }
  0x5d   : > { %v228_v1 = vld [vmem:[%s176_s6] sm:$0xff]  ;;  %v229_v4 = vld [vmem:[%s176_s6 + $0x8] sm:$0xff]  ;;  %v226_v5 = vld [vmem:[%s185_s25 + $0x10] sm:$0xff]  ;;  %p829_p5 = scmp.ne.s32.totalorder %s827_s21, 0 }
  0x5e   : > { %v232_v3 = vadd.f32 %v228_v1, %v224_v0  ;;  %v230_v6 = vld [vmem:[%s176_s6 + $0x20] sm:$0xff]  ;;  %v233_v7 = vadd.f32 %v229_v4, %v225_v2  ;;  %v227_v9 = vld [vmem:[%s185_s25 + $0x18] sm:$0xff]  ;;  %v231_v10 = vld [vmem:[%s176_s6 + $0x28] sm:$0xff]  ;;  %s391_s7 = sshll.u32 (%p829_p5), %s623_s13, 1 }
  0x5f   : > { %v234_v8 = vadd.f32 %v230_v6, %v226_v5  ;;  %v240_v11 = vld [vmem:[%s176_s6 + $0x10] sm:$0xff]  ;;  %v235_v12 = vadd.f32 %v231_v10, %v227_v9  ;;  %v241_v14 = vld [vmem:[%s176_s6 + $0x18] sm:$0xff]  ;;  %259 = sbr.rel (!%p829_p5) target bundleno = 127 (0x7f), region = 40  ;;  %s261_s26 = ssub.s32 (%p829_p5), 5, %s391_s7 }
  0x60   : > { %236 = vst [vmem:[%s751_s27] sm:$0xff] %v232_v3  ;;  %v244_v13 = vadd.f32 %v240_v11, %v224_v0  ;;  %v242_v15 = vld [vmem:[%s176_s6 + $0x30] sm:$0xff]  ;;  %v243_v16 = vld [vmem:[%s176_s6 + $0x38] sm:$0xff]  ;;  %237 = vst [vmem:[%s751_s27 + $0x8] sm:$0xff] %v233_v7  ;;  %v245_v17 = vadd.f32 %v241_v14, %v225_v2  ;;  %p262_p6 = scmp.lt.s32.totalorder (%p829_p5), %s261_s26, 2 }
  0x61   : > { %238 = vst [vmem:[%s751_s27 + $0x20] sm:$0xff] %v234_v8  ;;  %v246_v18 = vadd.f32 %v242_v15, %v226_v5  ;;  %v247_v19 = vadd.f32 %v243_v16, %v227_v9  ;;  %239 = vst [vmem:[%s751_s27 + $0x28] sm:$0xff] %v235_v12 }
  0x62   : > { %248 = vst [vmem:[%s751_s27 + $0x10] sm:$0xff] %v244_v13  ;;  %249 = vst [vmem:[%s751_s27 + $0x18] sm:$0xff] %v245_v17 }
  0x63   : > { %250 = vst [vmem:[%s751_s27 + $0x30] sm:$0xff] %v246_v18  ;;  %251 = vst [vmem:[%s751_s27 + $0x38] sm:$0xff] %v247_v19 }
  0x64   : > { %s838_s26 = smov (!%p262_p6, %s261_s26), 2 }
  0x65   : > { %s765_s28 = sshll.u32 %s838_s26, 9 }
  0x66   : > { %s267_s30 = ssub.s32 1024, %s765_s28 }
  0x67   : > { %268 = vsyncadd %s253_s20, %s267_s30  ;;  %p394_p7 = scmp.ne.s32.totalorder %s765_s28, 0  ;;  %s408_s21 = sshll.u32 %s623_s13, 10 }
  0x68   : > { %s775_s5 = scalar_lea.hbm %s824_s2, %s408_s21  ;;  %s274_s8 = sshll.u32 %s751_s27, 4  ;;  %s778_s8 = int_to_ptr.vmem [resolvable:$true] %s274_s8 }
  0x69   : > { %s508_s14 = scalar_lea.vmem %s778_s8, %s765_s28  ;;  %s584_s16 = smov [#allocation7]  }
  0x6a   : > { %p509_p8 = scmp.ne.s32.totalorder %s778_s8, %s508_s14  ;;  %s512_s24 = sshll.u32 %s584_s16, 4  ;;  %s513_s24 = int_to_ptr.vmem [resolvable:$false] %s512_s24 }
  0x6b   : > { %s514_s13 = scalar_lea.vmem %s513_s24, 2048  ;;  %p515_p0 = scmp.lt.s32.totalorder %s778_s8, %s513_s24 }
  0x6c   : > { %p510_p11 = pnand %p509_p8, %p394_p7  ;;  %p516_p1 = scmp.lt.s32.totalorder %s514_s13, %s508_s14 }
  0x6e   : > { %p511_p12 = pneg %p510_p11  ;;  %p517_p3 = por %p516_p1, %p515_p0 }
  0x70   : > { %p518_p9 = pnand %p517_p3, %p511_p12 }
  0x72   : > { %521 = shalt.err (!%p518_p9)
}
  0x73   : > { %s522_s29 = scalar_lea.hbm %s775_s5, %s765_s28  ;;  %s526_s23 = scalar_lea.hbm %s824_s2, 2560 }
  0x74   : > { %p523_p10 = scmp.ne.s32.totalorder %s775_s5, %s522_s29  ;;  %p527_p4 = scmp.lt.s32.totalorder %s775_s5, %s824_s2 }
  0x75   : > { %p528_p5 = scmp.lt.s32.totalorder %s526_s23, %s522_s29 }
  0x76   : > { %p524_p13 = pnand %p523_p10, %p394_p7 }
  0x77   : > { %p529_p6 = por %p528_p5, %p527_p4 }
  0x78   : > { %p525_p2 = pneg %p524_p13 }
  0x7a   : > { %p530_p8 = pnand %p529_p6, %p525_p2 }
  0x7c   : > { %533 = shalt.err (!%p530_p8)
}
  0x7d   : > { %s585_s7 = smov 512   ;;  %s586_s26 = smov 32  }
  0x7e   : > { %280 = dma.vmem_to_hbm [thread:$0]  (%p394_p7), %s778_s8, %s765_s28, %s775_s5, %s253_s20, %s585_s7, %s585_s7, %s586_s26  }
  0x7f PF: > { %p417_p11 = scmp.ge.s32.totalorder %s576_s12, 2  ;;  %s289_s30 = sand.u32 1, %s564_s9  }
  0x80   : > { %p830_p12 = scmp.ne.s32.totalorder %s828_s22, 0  ;;  %s290_s21 = scalar_lea.sflag [#allocation4], %s289_s30 }
  0x82   : > { %p414_p0 = pnand %p417_p11, %p830_p12 }
  0x84   : > { %p415_p1 = pneg %p414_p0 }
  0x86   : > { %559 = dma.done.wait (%p415_p1), %s290_s21, 1024  }
  0x87   : > { %561 = vsyncadd (%p415_p1), %s290_s21, 4294966272  ;;  %p18_p3 = scmp.ge.s32.totalorder %s627_s15, 5   ;;  %s831_s9 = smov %s568_s10 }
  0x88   : > { %s832_s10 = smov %s572_s11  ;;  %s833_s11 = smov %s639_s18 }
  0x89   : > { %s834_s12 = smov %s627_s15  ;;  %20 = sbr.rel (!%p18_p3) target bundleno = 7 (0x7), region = 86 }
  0x8e   :  { %295 = vsyncpa [#allocation3], 1 }
  0x8f   :  { %297 = vsyncpa [#allocation3 + $0x1], 1 }
  0x90   :  { %298 = vsyncpa [#allocation6], 1 }
  0x91   :  { %300 = vsyncpa [#allocation6 + $0x1], 1 }
  0x92   :  { %301 = vsyncpa [#allocation4], 1 }
  0x93   :  { %303 = vsyncpa [#allocation4 + $0x1], 1 }

</bundles_post_ra>
